<compile_context>
chip_gen: v5e
topology: v5e:2x2
jax: 0.10.0
libtpu: 0.0.40
codegen_flags: <defaults>
</compile_context>

<pallas_src>
import jax
import jax.numpy as jnp
from jax.experimental import pallas as pl
from jax.experimental.pallas import tpu as pltpu


_LANE = 128
_VMEM_LIMIT = 32 * 1024 * 1024          # explicit; v5e scoped default is only 16 MiB
_FUSED_VMEM_BUDGET = 20 * 1024 * 1024   # conservative vs v7x's 32 MiB scoped default


def _round_up(x, m):
    return ((x + m - 1) // m) * m


def _pad2d(x, rows, cols):
    r, c = x.shape
    if r == rows and c == cols:
        return x  # skip the extra HBM copy when already tile-aligned
    return jnp.pad(x, ((0, rows - r), (0, cols - c)))


def _pick_tile(dim, preferred):
    """Largest multiple of 128 that divides `dim` (a 128-multiple) and is <= preferred."""
    best = _LANE
    t = _LANE
    limit = min(dim, preferred)
    while t <= limit:
        if dim % t == 0:
            best = t
        t += _LANE
    return best


# --------------------------------------------------------------------------
# Fused path: support held entirely in VMEM, one pallas_call.
# --------------------------------------------------------------------------
def _fused_gcn_kernel(x_ref, w_ref, adj_ref, bias_ref, o_ref, support_ref):
    # support = x @ W, computed once (row-tile axis is sequential on one core)
    # and kept resident in VMEM for every adj row tile.
    @pl.when(pl.program_id(0) == 0)
    def _():
        support_ref[...] = jnp.dot(
            x_ref[...], w_ref[...], preferred_element_type=jnp.float32
        ).astype(support_ref.dtype)

    out = jnp.dot(adj_ref[...], support_ref[...], preferred_element_type=jnp.float32)
    o_ref[...] = (out + bias_ref[...]).astype(o_ref.dtype)


def _fused_gcn(x_p, w_p, adj_p, bias2d, tile_m):
    n_p, in_p = x_p.shape
    out_p = w_p.shape[1]
    grid = (n_p // tile_m,)
    return pl.pallas_call(
        _fused_gcn_kernel,
        out_shape=jax.ShapeDtypeStruct((n_p, out_p), jnp.float32),
        grid_spec=pltpu.PrefetchScalarGridSpec(
            num_scalar_prefetch=0,
            grid=grid,
            in_specs=[
                pl.BlockSpec((n_p, in_p), lambda i: (0, 0)),    # x   (resident)
                pl.BlockSpec((in_p, out_p), lambda i: (0, 0)),  # W   (resident)
                pl.BlockSpec((tile_m, n_p), lambda i: (i, 0)),  # adj (streamed)
                pl.BlockSpec((1, out_p), lambda i: (0, 0)),     # bias
            ],
            out_specs=pl.BlockSpec((tile_m, out_p), lambda i: (i, 0)),
            scratch_shapes=[pltpu.VMEM((n_p, out_p), jnp.bfloat16)],
        ),
        compiler_params=pltpu.CompilerParams(
            # The support scratch written at i == 0 is reused by every later
            # row tile, so this axis must stay sequential on a single core.
            dimension_semantics=("arbitrary",),
            vmem_limit_bytes=_VMEM_LIMIT,
        ),
        cost_estimate=pl.CostEstimate(
            flops=2 * n_p * in_p * out_p + 2 * n_p * n_p * out_p,
            transcendentals=0,
            bytes_accessed=2 * (n_p * in_p + in_p * out_p + n_p * n_p)
            + 4 * (out_p + n_p * out_p),
        ),
    )(x_p, w_p, adj_p, bias2d)


# --------------------------------------------------------------------------
# Tiled two-stage path (large N): stage 1 = x @ W (bf16 out, no bias),
# stage 2 = adj @ support + bias (f32 out, accumulate in the output block).
# --------------------------------------------------------------------------
def _matmul_kernel_direct(a_ref, b_ref, o_ref):
    # Single k step: no accumulator scratch, no finalize copy.
    o_ref[...] = jnp.dot(
        a_ref[...], b_ref[...], preferred_element_type=jnp.float32
    ).astype(o_ref.dtype)


def _matmul_kernel_acc(a_ref, b_ref, o_ref, acc_ref):
    k = pl.program_id(2)

    @pl.when(k == 0)
    def _():
        acc_ref[...] = jnp.zeros_like(acc_ref)

    acc_ref[...] += jnp.dot(a_ref[...], b_ref[...], preferred_element_type=jnp.float32)

    @pl.when(k == pl.num_programs(2) - 1)
    def _():
        o_ref[...] = acc_ref[...].astype(o_ref.dtype)


def _tiled_matmul(a, b, out_dtype, tm, tn, tk):
    """out = a @ b (no bias), f32 accumulation, arbitrary output dtype."""
    M, K = a.shape
    K2, N = b.shape
    assert K == K2 and M % tm == 0 and N % tn == 0 and K % tk == 0
    grid = (M // tm, N // tn, K // tk)
    single_k = grid[2] == 1
    kernel = _matmul_kernel_direct if single_k else _matmul_kernel_acc
    scratch = [] if single_k else [pltpu.VMEM((tm, tn), jnp.float32)]
    in_bytes = a.dtype.itemsize
    out_bytes = jnp.dtype(out_dtype).itemsize
    return pl.pallas_call(
        kernel,
        out_shape=jax.ShapeDtypeStruct((M, N), out_dtype),
        grid_spec=pltpu.PrefetchScalarGridSpec(
            num_scalar_prefetch=0,
            grid=grid,
            in_specs=[
                pl.BlockSpec((tm, tk), lambda i, j, k: (i, k)),
                pl.BlockSpec((tk, tn), lambda i, j, k: (k, j)),
            ],
            out_specs=pl.BlockSpec((tm, tn), lambda i, j, k: (i, j)),
            scratch_shapes=scratch,
        ),
        compiler_params=pltpu.CompilerParams(
            dimension_semantics=("parallel", "parallel", "arbitrary"),
            vmem_limit_bytes=_VMEM_LIMIT,
        ),
        cost_estimate=pl.CostEstimate(
            flops=2 * M * K * N,
            transcendentals=0,
            bytes_accessed=in_bytes * (M * K * grid[1] + K * N * grid[0])
            + out_bytes * M * N,
        ),
    )(a, b)


def _matmul_bias_kernel_accout(a_ref, b_ref, bias_ref, o_ref):
    # f32 output block doubles as the accumulator (no scratch, no copy).
    k = pl.program_id(2)
    prod = jnp.dot(a_ref[...], b_ref[...], preferred_element_type=jnp.float32)

    @pl.when(k == 0)
    def _():
        o_ref[...] = prod

    @pl.when(k != 0)
    def _():
        o_ref[...] = o_ref[...] + prod

    @pl.when(k == pl.num_programs(2) - 1)
    def _():
        o_ref[...] = o_ref[...] + bias_ref[...]


def _tiled_matmul_bias(a, b, bias2d, tm, tn, tk):
    """out = a @ b + bias (f32 output, accumulated in place in the output block)."""
    M, K = a.shape
    K2, N = b.shape
    assert K == K2 and bias2d.shape == (1, N)
    assert M % tm == 0 and N % tn == 0 and K % tk == 0
    grid = (M // tm, N // tn, K // tk)
    in_bytes = a.dtype.itemsize
    return pl.pallas_call(
        _matmul_bias_kernel_accout,
        out_shape=jax.ShapeDtypeStruct((M, N), jnp.float32),
        grid_spec=pltpu.PrefetchScalarGridSpec(
            num_scalar_prefetch=0,
            grid=grid,
            in_specs=[
                pl.BlockSpec((tm, tk), lambda i, j, k: (i, k)),
                pl.BlockSpec((tk, tn), lambda i, j, k: (k, j)),
                pl.BlockSpec((1, tn), lambda i, j, k: (0, j)),
            ],
            out_specs=pl.BlockSpec((tm, tn), lambda i, j, k: (i, j)),
            scratch_shapes=[],
        ),
        compiler_params=pltpu.CompilerParams(
            dimension_semantics=("parallel", "parallel", "arbitrary"),
            vmem_limit_bytes=_VMEM_LIMIT,
        ),
        cost_estimate=pl.CostEstimate(
            flops=2 * M * K * N,
            transcendentals=0,
            bytes_accessed=in_bytes * (M * K * grid[1] + K * N * grid[0])
            + 4 * (M * N + N * grid[0]),
        ),
    )(a, b, bias2d)


# --------------------------------------------------------------------------
# Public wrapper.
# --------------------------------------------------------------------------
def graph_convolution(x, adj, weight, bias=None, allow_fused=True):
    """x: [N, in_f], adj: [N, N], weight: [in_f, out_f], bias: [out_f] or None."""
    n, in_f = x.shape
    out_f = weight.shape[1]
    out_dtype = x.dtype

    n_p = _round_up(n, _LANE)
    in_p = _round_up(in_f, _LANE)
    out_p = _round_up(out_f, _LANE)

    # bf16 operands: MXU-native on v5e/v6e/v7x and half the HBM/DMA bytes.
    # All contractions accumulate in f32.  Zero padding is exact for this op;
    # padded output rows/cols are sliced away below.
    x_p = _pad2d(x.astype(jnp.bfloat16), n_p, in_p)
    adj_p = _pad2d(adj.astype(jnp.bfloat16), n_p, n_p)
    w_p = _pad2d(weight.astype(jnp.bfloat16), in_p, out_p)
    if bias is None:
        bias2d = jnp.zeros((1, out_p), jnp.float32)
    else:
        bias2d = _pad2d(bias.reshape(1, out_f).astype(jnp.float32), 1, out_p)

    # Fused single-call path: `support` lives only in VMEM.  Conservative VMEM
    # estimate including double-buffering of every BlockSpec input/output.
    fused_tile_m = _pick_tile(n_p, 256)
    fused_vmem = (
        2 * 2 * (n_p * in_p + in_p * out_p)   # x, W (bf16, double-buffered)
        + 2 * (n_p * out_p)                   # support scratch (bf16)
        + 2 * 2 * (fused_tile_m * n_p)        # adj tiles (bf16, double-buffered)
        + 2 * 4 * (fused_tile_m * out_p)      # out tiles (f32, double-buffered)
        + 2 * 4 * out_p                       # bias
    )

    if allow_fused and fused_vmem <= _FUSED_VMEM_BUDGET:
        out_full = _fused_gcn(x_p, w_p, adj_p, bias2d, fused_tile_m)
    else:
        # Stage 1: support = x @ W (bias-free, bf16 in HBM).  Tiles sized to the
        # real padded feature dims, so small in_f/out_f cost no padded MXU work.
        tm1 = _pick_tile(n_p, 512)
        tk1 = _pick_tile(in_p, 512)
        tn1 = _pick_tile(out_p, 512)
        support = _tiled_matmul(x_p, w_p, jnp.bfloat16, tm1, tn1, tk1)

        # Stage 2: out = adj @ support + bias.  Large M/K tiles cut adj/support
        # re-reads; keep >= 2 row tiles so the parallel i axis can feed both
        # v7x TensorCores.
        tm2 = _pick_tile(n_p, 512)
        if n_p // tm2 < 2 and n_p > _LANE:
            tm2 = _pick_tile(n_p, n_p // 2)
        tk2 = _pick_tile(n_p, 512)
        tn2 = _pick_tile(out_p, 512)
        out_full = _tiled_matmul_bias(adj_p, support, bias2d, tm2, tn2, tk2)

    return out_full[:n, :out_f].astype(out_dtype)


def init_params(key, in_features, out_features):
    """Mirror GraphConvolution.reset_parameters: uniform(-stdv, stdv)."""
    stdv = 1.0 / jnp.sqrt(jnp.float32(out_features))
    kw, kb = jax.random.split(key)
    weight = jax.random.uniform(
        kw, (in_features, out_features), jnp.float32, minval=-stdv, maxval=stdv)
    bias = jax.random.uniform(
        kb, (out_features,), jnp.float32, minval=-stdv, maxval=stdv)
    return weight, bias


if __name__ == "__main__":
    key = jax.random.PRNGKey(0)
    k_x, k_adj, k_p, k_x2, k_adj2, k_p2 = jax.random.split(key, 6)

    # --- Small GAMENet-style case: exercises the fused single-call path. ---
    N, IN_F, OUT_F = 16, 32, 32
    x = jax.random.normal(k_x, (N, IN_F), jnp.float32)
    adj_raw = jax.random.uniform(k_adj, (N, N), jnp.float32)
    adj = adj_raw / jnp.sum(adj_raw, axis=1, keepdims=True)   # row-normalized adjacency
    weight, bias = init_params(k_p, IN_F, OUT_F)

    out = jax.block_until_ready(graph_convolution(x, adj, weight, bias))
    ref = adj @ (x @ weight) + bias
    assert out.shape == (N, OUT_F)
    assert jnp.allclose(out, ref, atol=3e-2, rtol=3e-2), float(jnp.abs(out - ref).max())

    # --- Larger, non-aligned case forced onto the tiled two-stage path. ---
    N2, IN_F2, OUT_F2 = 384, 96, 160
    x2 = jax.random.normal(k_x2, (N2, IN_F2), jnp.float32)
    adj2_raw = jax.random.uniform(k_adj2, (N2, N2), jnp.float32)
    adj2 = adj2_raw / jnp.sum(adj2_raw, axis=1, keepdims=True)
    w2, b2 = init_params(k_p2, IN_F2, OUT_F2)

    out2 = jax.block_until_ready(
        graph_convolution(x2, adj2, w2, b2, allow_fused=False))
    ref2 = adj2 @ (x2 @ w2) + b2
    assert out2.shape == (N2, OUT_F2)
    assert jnp.allclose(out2, ref2, atol=3e-2, rtol=3e-2), float(jnp.abs(out2 - ref2).max())

    print("KERNEL_OK")
</pallas_src>

<mosaic_0001>
module attributes {stable_mosaic.version = 11 : i64} {
  func.func @_fused_gcn_kernel(%arg0: i32, %arg1: memref<128x128xbf16, #tpu.memory_space<vmem>>, %arg2: memref<128x128xbf16, #tpu.memory_space<vmem>>, %arg3: memref<128x128xbf16, #tpu.memory_space<vmem>>, %arg4: memref<1x128xf32, #tpu.memory_space<vmem>>, %arg5: memref<128x128xf32, #tpu.memory_space<vmem>>, %arg6: memref<128x128xbf16, #tpu.memory_space<vmem>>) attributes {dimension_semantics = [#tpu.dimension_semantics<arbitrary>], iteration_bounds = array<i64: 1>, scalar_prefetch = 0 : i64, scratch_operands = 1 : i64, tpu.core_type = #tpu.core_type<tc>, window_params = [{pipeline_mode = #tpu.pipeline_mode<synchronous>, transform_indices = @transform_0, window_bounds = array<i64: 128, 128>}, {pipeline_mode = #tpu.pipeline_mode<synchronous>, transform_indices = @transform_1, window_bounds = array<i64: 128, 128>}, {transform_indices = @transform_2, window_bounds = array<i64: 128, 128>}, {pipeline_mode = #tpu.pipeline_mode<synchronous>, transform_indices = @transform_3, window_bounds = array<i64: 1, 128>}, {transform_indices = @transform_4, window_bounds = array<i64: 128, 128>}]} {
    %c0_i32 = arith.constant 0 : i32
    %0 = arith.cmpi eq, %arg0, %c0_i32 : i32
    %1 = arith.extui %0 : i1 to i32
    %c0_i32_0 = arith.constant 0 : i32
    %2 = arith.cmpi ne, %1, %c0_i32_0 : i32
    scf.if %2 {
      %c0_8 = arith.constant 0 : index
      %c0_9 = arith.constant 0 : index
      %10 = vector.load %arg1[%c0_8, %c0_9] : memref<128x128xbf16, #tpu.memory_space<vmem>>, vector<128x128xbf16>
      %c0_10 = arith.constant 0 : index
      %c0_11 = arith.constant 0 : index
      %11 = vector.load %arg2[%c0_10, %c0_11] : memref<128x128xbf16, #tpu.memory_space<vmem>>, vector<128x128xbf16>
      %cst_12 = arith.constant dense<0.000000e+00> : vector<128x128xf32>
      %12 = tpu.matmul %10, %11, %cst_12 {dimension_numbers = #tpu.dot_dimension_numbers<[1], [0], [0], [1], [0, 0, 1, 1], [], []>} : vector<128x128xbf16>, vector<128x128xbf16>, vector<128x128xf32> -> vector<128x128xf32>
      %13 = arith.truncf %12 : vector<128x128xf32> to vector<128x128xbf16>
      %c0_13 = arith.constant 0 : index
      %c0_14 = arith.constant 0 : index
      %14 = vector.load %arg6[%c0_13, %c0_14] : memref<128x128xbf16, #tpu.memory_space<vmem>>, vector<128x128xbf16>
      tpu.vector_store %arg6[%c0_13, %c0_14], %13 {strides = array<i32>} : memref<128x128xbf16, #tpu.memory_space<vmem>>, vector<128x128xbf16>,
    } else {
    }
    %c0 = arith.constant 0 : index
    %c0_1 = arith.constant 0 : index
    %3 = vector.load %arg3[%c0, %c0_1] : memref<128x128xbf16, #tpu.memory_space<vmem>>, vector<128x128xbf16>
    %c0_2 = arith.constant 0 : index
    %c0_3 = arith.constant 0 : index
    %4 = vector.load %arg6[%c0_2, %c0_3] : memref<128x128xbf16, #tpu.memory_space<vmem>>, vector<128x128xbf16>
    %cst = arith.constant dense<0.000000e+00> : vector<128x128xf32>
    %5 = tpu.matmul %3, %4, %cst {dimension_numbers = #tpu.dot_dimension_numbers<[1], [0], [0], [1], [0, 0, 1, 1], [], []>} : vector<128x128xbf16>, vector<128x128xbf16>, vector<128x128xf32> -> vector<128x128xf32>
    %c0_4 = arith.constant 0 : index
    %c0_5 = arith.constant 0 : index
    %6 = vector.load %arg4[%c0_4, %c0_5] : memref<1x128xf32, #tpu.memory_space<vmem>>, vector<1x128xf32>
    %7 = vector.broadcast %6 : vector<1x128xf32> to vector<128x128xf32>
    %8 = arith.addf %5, %7 : vector<128x128xf32>
    %c0_6 = arith.constant 0 : index
    %c0_7 = arith.constant 0 : index
    %9 = vector.load %arg5[%c0_6, %c0_7] : memref<128x128xf32, #tpu.memory_space<vmem>>, vector<128x128xf32>
    tpu.vector_store %arg5[%c0_6, %c0_7], %8 {strides = array<i32>} : memref<128x128xf32, #tpu.memory_space<vmem>>, vector<128x128xf32>,
    return
  }
  func.func @transform_0(%arg0: i32) -> (i32, i32) {
    %c0_i32 = arith.constant 0 : i32
    %c0_i32_0 = arith.constant 0 : i32
    %c0_i32_1 = arith.constant 0 : i32
    return %c0_i32, %c0_i32_0 : i32, i32
  }
  func.func @transform_1(%arg0: i32) -> (i32, i32) {
    %c0_i32 = arith.constant 0 : i32
    %c0_i32_0 = arith.constant 0 : i32
    %c0_i32_1 = arith.constant 0 : i32
    return %c0_i32, %c0_i32_0 : i32, i32
  }
  func.func @transform_2(%arg0: i32) -> (i32, i32) {
    %c0_i32 = arith.constant 0 : i32
    %c0_i32_0 = arith.constant 0 : i32
    return %arg0, %c0_i32 : i32, i32
  }
  func.func @transform_3(%arg0: i32) -> (i32, i32) {
    %c0_i32 = arith.constant 0 : i32
    %c0_i32_0 = arith.constant 0 : i32
    %c0_i32_1 = arith.constant 0 : i32
    return %c0_i32, %c0_i32_0 : i32, i32
  }
  func.func @transform_4(%arg0: i32) -> (i32, i32) {
    %c0_i32 = arith.constant 0 : i32
    %c0_i32_0 = arith.constant 0 : i32
    return %arg0, %c0_i32 : i32, i32
  }
}

</mosaic_0001>

<bundles_post_ra>
// kernel: tpu_custom_call.1
= control target key start
LH: loop header
LB: loop body
LE: loop exit
PB: predicated region body
PF: predicated region fallthrough
CT: control target
= control target key end

     0   :  { %9 = vsyncpa [#allocation4], 0  ;;  %s877_s0 = inlined_call_operand.hbm [shape: bf16[128,128], index: 0, kind: input, shape index: {}]   ;;  %s878_s1 = inlined_call_operand.hbm [shape: bf16[128,128], index: 1, kind: input, shape index: {}]   ;;  %s879_s2 = inlined_call_operand.hbm [shape: bf16[128,128], index: 2, kind: input, shape index: {}]   ;;  %s880_s3 = inlined_call_operand.vmem [shape: f32[1,128], index: 3, kind: input, shape index: {}]   ;;  %s881_s4 = inlined_call_operand.hbm [shape: f32[128,128], index: 4, kind: output, shape index: {}]  }
   0x1   :  { %10 = vsyncpa [#allocation7], 0 }
   0x2   :  { %11 = vsyncpa [#allocation5], 0  ;;  %s29_s17 = sshll.u32 %s878_s1, 4  ;;  %s829_s18 = smov [#allocation6]   ;;  %s30_s17 = int_to_ptr.hbm [resolvable:$true] %s29_s17 }
   0x3   :  { %s31_s19 = sshll.u32 %s829_s18, 4  ;;  %s16_s22 = sshll.u32 %s877_s0, 4  ;;  %s32_s19 = int_to_ptr.vmem [resolvable:$true] %s31_s19  ;;  %s17_s22 = int_to_ptr.hbm [resolvable:$true] %s16_s22 }
   0x4   :  { %s830_s23 = smov 64   ;;  %s831_s24 = smov 4  }
   0x5   :  { %37 = dma.hbm_to_vmem [thread:$0]  %s30_s17, 1024, %s32_s19, [#allocation7], %s830_s23, %s830_s23, %s831_s24  }
   0x6   :  { %s832_s25 = smov [#allocation3]   ;;  %s42_s29 = sshll.u32 %s879_s2, 4  ;;  %s43_s29 = int_to_ptr.hbm [resolvable:$true] %s42_s29 }
   0x7   :  { %s18_s26 = sshll.u32 %s832_s25, 4  ;;  %s833_s1 = smov [#allocation8]   ;;  %s19_s26 = int_to_ptr.vmem [resolvable:$true] %s18_s26 }
   0x8   :  { %24 = dma.hbm_to_vmem [thread:$0]  %s17_s22, 1024, %s19_s26, [#allocation4], %s830_s23, %s830_s23, %s831_s24  }
   0x9   :  { %s44_s30 = sshll.u32 %s833_s1, 4  ;;  %s45_s30 = int_to_ptr.vmem [resolvable:$true] %s44_s30 }
   0xa   :  { %50 = dma.hbm_to_vmem [thread:$0]  %s43_s29, 1024, %s45_s30, [#allocation7], %s830_s23, %s830_s23, %s831_s24  }
   0xb   :  { %823 = dma.done.wait [#allocation4], 1024  }
   0xc   :  { %824 = vsyncadd [#allocation4], 4294966272 }
   0xd   :  { %825 = dma.done.wait [#allocation7], 2048  }
   0xe   :  { %826 = vsyncadd [#allocation7], 4294965248  ;;  %v638_v0 = vld [vmem:[#allocation6 + $0x38] sm:$0xff]  ;;  %v637_v1 = vld [vmem:[#allocation6 + $0x30] sm:$0xff]  ;;  %s481_s8 = sshll.u32 %s881_s4, 4  ;;  %s835_s9 = smov 128   ;;  %s482_s8 = int_to_ptr.hbm [resolvable:$true] %s481_s8 }
   0xf   :  { %702 = vmatpush.bf16.msra.mxu2 %v638_v0  ;;  %197 = vmatpush.bf16.msra.mxu0 %v638_v0  ;;  %v636_v2 = vld [vmem:[#allocation6 + $0x28] sm:$0xff]  ;;  %v635_v3 = vld [vmem:[#allocation6 + $0x20] sm:$0xff]  ;;  %v634_v4 = vld [vmem:[#allocation6 + $0x18] sm:$0xff]  ;;  %s836_s10 = smov 8  }
  0x10   :  { %v633_v5 = vld [vmem:[#allocation6 + $0x10] sm:$0xff]  ;;  %v632_v6 = vld [vmem:[#allocation6 + $0x8] sm:$0xff]  ;;  %v631_v7 = vld [vmem:[#allocation6] sm:$0xff] }
  0x11   :  { %v627_v8 = vld [vmem:[#allocation3 + $0x20] sm:$0xff]  ;;  %v628_v10 = vld [vmem:[#allocation3 + $0x28] sm:$0xff]  ;;  %v629_v12 = vld [vmem:[#allocation3 + $0x30] sm:$0xff] }
  0x12   :  { %v623_v9 = vld [vmem:[#allocation3] sm:$0xff]  ;;  %v624_v11 = vld [vmem:[#allocation3 + $0x8] sm:$0xff]  ;;  %v625_v13 = vld [vmem:[#allocation3 + $0x10] sm:$0xff] }
  0x13   :  { %703 = vmatpush.bf16.msra.mxu2 %v637_v1  ;;  %198 = vmatpush.bf16.msra.mxu0 %v637_v1  ;;  %v630_v14 = vld [vmem:[#allocation3 + $0x38] sm:$0xff]  ;;  %v639_v48 = vld [vmem:[#allocation8] sm:$0xff]  ;;  %v640_v50 = vld [vmem:[#allocation8 + $0x8] sm:$0xff] }
  0x14   :  { %v626_v15 = vld [vmem:[#allocation3 + $0x18] sm:$0xff]  ;;  %v643_v49 = vld [vmem:[#allocation8 + $0x20] sm:$0xff]  ;;  %v644_v51 = vld [vmem:[#allocation8 + $0x28] sm:$0xff] }
  0x15   :  { %v641_v52 = vld [vmem:[#allocation8 + $0x10] sm:$0xff]  ;;  %v642_v54 = vld [vmem:[#allocation8 + $0x18] sm:$0xff]  ;;  %v726_v56 = vld [vmem:[%s880_s3] ss:$0 sm:$0xff]  ;;  %s834_s3 = smov [#allocation9]  }
  0x16   :  { %v645_v53 = vld [vmem:[#allocation8 + $0x30] sm:$0xff]  ;;  %v646_v55 = vld [vmem:[#allocation8 + $0x38] sm:$0xff]  ;;  %s479_s5 = sshll.u32 %s834_s3, 4  ;;  %s480_s5 = int_to_ptr.vmem [resolvable:$true] %s479_s5 }
  0x17   :  { %704 = vmatpush.bf16.msra.mxu2 %v636_v2  ;;  %199 = vmatpush.bf16.msra.mxu0 %v636_v2 }
  0x1b   :  { %705 = vmatpush.bf16.msra.mxu2 %v635_v3  ;;  %200 = vmatpush.bf16.msra.mxu0 %v635_v3 }
  0x1f   :  { %706 = vmatpush.bf16.msra.mxu2 %v634_v4  ;;  %201 = vmatpush.bf16.msra.mxu0 %v634_v4 }
  0x23   :  { %707 = vmatpush.bf16.msra.mxu2 %v633_v5  ;;  %202 = vmatpush.bf16.msra.mxu0 %v633_v5 }
  0x27   :  { %708 = vmatpush.bf16.msra.mxu2 %v632_v6  ;;  %203 = vmatpush.bf16.msra.mxu0 %v632_v6 }
  0x2b   :  { %709 = vmatpush.bf16.msra.mxu2 %v631_v7  ;;  %204 = vmatpush.bf16.msra.mxu0 %v631_v7 }
  0x2e   :  { %225 = vmatmul.bf16.vlgmr.msra.gmra.mxu2 %v627_v8  ;;  %205 = vmatmul.bf16.vlgmr.msra.gmra.mxu0 %v623_v9 }
  0x3e   :  { %230 = vmatmul.bf16.gmra.mxu2 %v628_v10  ;;  %210 = vmatmul.bf16.gmra.mxu0 %v624_v11 }
  0x4e   :  { %235 = vmatmul.bf16.gmra.mxu2 %v629_v12  ;;  %215 = vmatmul.bf16.gmra.mxu0 %v625_v13 }
  0x5e   :  { %240 = vmatmul.bf16.gmra.mxu2 %v630_v14  ;;  %220 = vmatmul.bf16.gmra.mxu0 %v626_v15 }
  0xab   :  { %v206_v16 = vpop.f32.mrf.mxu0 }
  0xb1   :  { %v226_v17 = vpop.f32.mrf.mxu2 }
  0xb3   :  { %v208_v18 = vpop.f32.mrf.mxu0 }
  0xb4   :  { %v658_v19 = vpack.c.bf16 %v208_v18, %v206_v16 }
  0xb6   :  { %659 = vst [vmem:[#allocation2 + $0x30] sm:$0xff] %v658_v19  }
  0xb9   :  { %v228_v20 = vpop.f32.mrf.mxu2 }
  0xba   :  { %v678_v21 = vpack.c.bf16 %v228_v20, %v226_v17 }
  0xbb   :  { %v211_v22 = vpop.f32.mrf.mxu0 }
  0xbc   :  { %698 = vst [vmem:[#allocation2 + $0x8] sm:$0xff] %v678_v21  }
  0xbd   :  { %v647_v47 = vld [vmem:[#allocation2 + $0x30] sm:$0xff] }
  0xc1   :  { %v231_v23 = vpop.f32.mrf.mxu2 }
  0xc3   :  { %v213_v24 = vpop.f32.mrf.mxu0  ;;  %v651_v43 = vld [vmem:[#allocation2 + $0x8] sm:$0xff] }
  0xc4   :  { %v663_v25 = vpack.c.bf16 %v213_v24, %v211_v22 }
  0xc6   :  { %695 = vst [vmem:[#allocation2] sm:$0xff] %v663_v25  }
  0xc9   :  { %v233_v26 = vpop.f32.mrf.mxu2 }
  0xca   :  { %v683_v27 = vpack.c.bf16 %v233_v26, %v231_v23 }
  0xcb   :  { %v216_v28 = vpop.f32.mrf.mxu0 }
  0xcc   :  { %699 = vst [vmem:[#allocation2 + $0x20] sm:$0xff] %v683_v27  }
  0xcd   :  { %v648_v46 = vld [vmem:[#allocation2] sm:$0xff] }
  0xd1   :  { %v236_v29 = vpop.f32.mrf.mxu2 }
  0xd3   :  { %v218_v30 = vpop.f32.mrf.mxu0  ;;  %v652_v42 = vld [vmem:[#allocation2 + $0x20] sm:$0xff] }
  0xd4   :  { %v668_v31 = vpack.c.bf16 %v218_v30, %v216_v28 }
  0xd6   :  { %696 = vst [vmem:[#allocation2 + $0x18] sm:$0xff] %v668_v31  }
  0xd9   :  { %v238_v32 = vpop.f32.mrf.mxu2 }
  0xda   :  { %v688_v33 = vpack.c.bf16 %v238_v32, %v236_v29 }
  0xdb   :  { %v221_v34 = vpop.f32.mrf.mxu0 }
  0xdc   :  { %700 = vst [vmem:[#allocation2 + $0x28] sm:$0xff] %v688_v33  }
  0xdd   :  { %v649_v45 = vld [vmem:[#allocation2 + $0x18] sm:$0xff] }
  0xe1   :  { %v241_v35 = vpop.f32.mrf.mxu2 }
  0xe3   :  { %v223_v36 = vpop.f32.mrf.mxu0  ;;  %v653_v41 = vld [vmem:[#allocation2 + $0x28] sm:$0xff] }
  0xe4   :  { %v673_v37 = vpack.c.bf16 %v223_v36, %v221_v34 }
  0xe6   :  { %697 = vst [vmem:[#allocation2 + $0x10] sm:$0xff] %v673_v37  }
  0xe9   :  { %v243_v38 = vpop.f32.mrf.mxu2 }
  0xea   :  { %v693_v39 = vpack.c.bf16 %v243_v38, %v241_v35 }
  0xec   :  { %701 = vst [vmem:[#allocation2 + $0x38] sm:$0xff] %v693_v39  }
  0xed   :  { %v650_v44 = vld [vmem:[#allocation2 + $0x10] sm:$0xff] }
  0xf3   :  { %v654_v40 = vld [vmem:[#allocation2 + $0x38] sm:$0xff] }
  0xf4   :  { %410 = vmatpush.bf16.msra.mxu1 %v654_v40  ;;  %710 = vmatpush.bf16.msra.mxu3 %v654_v40 }
  0xf8   :  { %411 = vmatpush.bf16.msra.mxu1 %v653_v41  ;;  %711 = vmatpush.bf16.msra.mxu3 %v653_v41 }
  0xfc   :  { %412 = vmatpush.bf16.msra.mxu1 %v652_v42  ;;  %712 = vmatpush.bf16.msra.mxu3 %v652_v42 }
 0x100   :  { %413 = vmatpush.bf16.msra.mxu1 %v651_v43  ;;  %713 = vmatpush.bf16.msra.mxu3 %v651_v43 }
 0x104   :  { %414 = vmatpush.bf16.msra.mxu1 %v650_v44  ;;  %714 = vmatpush.bf16.msra.mxu3 %v650_v44 }
 0x108   :  { %415 = vmatpush.bf16.msra.mxu1 %v649_v45  ;;  %715 = vmatpush.bf16.msra.mxu3 %v649_v45 }
 0x10c   :  { %416 = vmatpush.bf16.msra.mxu1 %v648_v46  ;;  %716 = vmatpush.bf16.msra.mxu3 %v648_v46 }
 0x110   :  { %417 = vmatpush.bf16.msra.mxu1 %v647_v47  ;;  %717 = vmatpush.bf16.msra.mxu3 %v647_v47 }
 0x113   :  { %418 = vmatmul.bf16.vlgmr.msra.gmra.mxu1 %v639_v48  ;;  %438 = vmatmul.bf16.vlgmr.msra.gmra.mxu3 %v643_v49 }
 0x123   :  { %423 = vmatmul.bf16.gmra.mxu1 %v640_v50  ;;  %443 = vmatmul.bf16.gmra.mxu3 %v644_v51 }
 0x133   :  { %428 = vmatmul.bf16.gmra.mxu1 %v641_v52  ;;  %448 = vmatmul.bf16.gmra.mxu3 %v645_v53 }
 0x143   :  { %433 = vmatmul.bf16.gmra.mxu1 %v642_v54  ;;  %453 = vmatmul.bf16.gmra.mxu3 %v646_v55 }
 0x190   :  { %v419_v57 = vpop.f32.mrf.mxu1 }
 0x191   :  { %v420_v58 = vadd.f32 %v726_v56, %v419_v57 }
 0x193   :  { %459 = vst [vmem:[#allocation9] sm:$0xff] %v420_v58 }
 0x196   :  { %v439_v59 = vpop.f32.mrf.mxu3 }
 0x197   :  { %v440_v60 = vadd.f32 %v726_v56, %v439_v59 }
 0x198   :  { %v421_v61 = vpop.f32.mrf.mxu1 }
 0x199   :  { %467 = vst [vmem:[#allocation9 + $0x40] sm:$0xff] %v440_v60  ;;  %v422_v62 = vadd.f32 %v726_v56, %v421_v61 }
 0x19b   :  { %460 = vst [vmem:[#allocation9 + $0x8] sm:$0xff] %v422_v62 }
 0x19e   :  { %v441_v63 = vpop.f32.mrf.mxu3 }
 0x19f   :  { %v442_v0 = vadd.f32 %v726_v56, %v441_v63 }
 0x1a0   :  { %v424_v1 = vpop.f32.mrf.mxu1 }
 0x1a1   :  { %468 = vst [vmem:[#allocation9 + $0x48] sm:$0xff] %v442_v0  ;;  %v425_v2 = vadd.f32 %v726_v56, %v424_v1 }
 0x1a3   :  { %461 = vst [vmem:[#allocation9 + $0x10] sm:$0xff] %v425_v2 }
 0x1a6   :  { %v444_v3 = vpop.f32.mrf.mxu3 }
 0x1a7   :  { %v445_v4 = vadd.f32 %v726_v56, %v444_v3 }
 0x1a8   :  { %v426_v5 = vpop.f32.mrf.mxu1 }
 0x1a9   :  { %469 = vst [vmem:[#allocation9 + $0x50] sm:$0xff] %v445_v4  ;;  %v427_v6 = vadd.f32 %v726_v56, %v426_v5 }
 0x1ab   :  { %462 = vst [vmem:[#allocation9 + $0x18] sm:$0xff] %v427_v6 }
 0x1ae   :  { %v446_v7 = vpop.f32.mrf.mxu3 }
 0x1af   :  { %v447_v8 = vadd.f32 %v726_v56, %v446_v7 }
 0x1b0   :  { %v429_v9 = vpop.f32.mrf.mxu1 }
 0x1b1   :  { %470 = vst [vmem:[#allocation9 + $0x58] sm:$0xff] %v447_v8  ;;  %v430_v10 = vadd.f32 %v726_v56, %v429_v9 }
 0x1b3   :  { %463 = vst [vmem:[#allocation9 + $0x20] sm:$0xff] %v430_v10 }
 0x1b6   :  { %v449_v11 = vpop.f32.mrf.mxu3 }
 0x1b7   :  { %v450_v12 = vadd.f32 %v726_v56, %v449_v11 }
 0x1b8   :  { %v431_v13 = vpop.f32.mrf.mxu1 }
 0x1b9   :  { %471 = vst [vmem:[#allocation9 + $0x60] sm:$0xff] %v450_v12  ;;  %v432_v14 = vadd.f32 %v726_v56, %v431_v13 }
 0x1bb   :  { %464 = vst [vmem:[#allocation9 + $0x28] sm:$0xff] %v432_v14 }
 0x1be   :  { %v451_v15 = vpop.f32.mrf.mxu3 }
 0x1bf   :  { %v452_v16 = vadd.f32 %v726_v56, %v451_v15 }
 0x1c0   :  { %v434_v17 = vpop.f32.mrf.mxu1 }
 0x1c1   :  { %472 = vst [vmem:[#allocation9 + $0x68] sm:$0xff] %v452_v16  ;;  %v435_v18 = vadd.f32 %v726_v56, %v434_v17 }
 0x1c3   :  { %465 = vst [vmem:[#allocation9 + $0x30] sm:$0xff] %v435_v18 }
 0x1c6   :  { %v454_v19 = vpop.f32.mrf.mxu3 }
 0x1c7   :  { %v455_v20 = vadd.f32 %v726_v56, %v454_v19 }
 0x1c8   :  { %v436_v21 = vpop.f32.mrf.mxu1 }
 0x1c9   :  { %473 = vst [vmem:[#allocation9 + $0x70] sm:$0xff] %v455_v20  ;;  %v437_v22 = vadd.f32 %v726_v56, %v436_v21 }
 0x1cb   :  { %466 = vst [vmem:[#allocation9 + $0x38] sm:$0xff] %v437_v22 }
 0x1ce   :  { %v456_v23 = vpop.f32.mrf.mxu3 }
 0x1cf   :  { %v457_v24 = vadd.f32 %v726_v56, %v456_v23 }
 0x1d1   :  { %474 = vst [vmem:[#allocation9 + $0x78] sm:$0xff] %v457_v24 }
 0x1d2   :  { %487 = dma.vmem_to_hbm [thread:$0]  %s480_s5, 2048, %s482_s8, [#allocation5], %s835_s9, %s835_s9, %s836_s10  }
 0x1d3   :  { %827 = dma.done.wait [#allocation5], 2048  }
 0x1d4   :  { %828 = vsyncadd [#allocation5], 4294965248 }
 0x1d5   :  { %492 = vsyncpa [#allocation4], 1 }
 0x1d6   :  { %493 = vsyncpa [#allocation7], 1 }
 0x1d7   :  { %494 = vsyncpa [#allocation5], 1 }

</bundles_post_ra>
